<compile_context>
chip_gen: v6e
topology: v6e:2x2x1
jax: 0.10.0
libtpu: 0.0.40
codegen_flags: <defaults>
</compile_context>

<pallas_src>
import functools

import jax
import jax.numpy as jnp
from jax import lax
from jax.experimental import pallas as pl
from jax.experimental.pallas import tpu as pltpu


def _ls_ce_kernel(x_ref, tgt_ref, loss_ref, m_ref, l_ref, s_ref, g_ref, *,
                  num_classes, confidence, smoothing):
    j = pl.program_id(1)
    num_c_steps = pl.num_programs(1)

    @pl.when(j == 0)
    def _():
        m_ref[...] = jnp.full(m_ref.shape, -jnp.inf, dtype=jnp.float32)
        l_ref[...] = jnp.zeros(l_ref.shape, dtype=jnp.float32)
        s_ref[...] = jnp.zeros(s_ref.shape, dtype=jnp.float32)
        g_ref[...] = jnp.zeros(g_ref.shape, dtype=jnp.float32)

    x = x_ref[...].astype(jnp.float32)          # (tile_n, tile_c)
    tgt = tgt_ref[...]                          # (tile_n, 1) int32
    tn, tc = x.shape

    # --- online logsumexp carry ---------------------------------------------
    m_old = m_ref[...]
    m_new = jnp.maximum(m_old, jnp.max(x, axis=-1, keepdims=True))
    l_ref[...] = (l_ref[...] * jnp.exp(m_old - m_new)
                  + jnp.sum(jnp.exp(x - m_new), axis=-1, keepdims=True))
    m_ref[...] = m_new

    # --- running sum of raw logits (smoothing term); no rescale needed ------
    s_ref[...] = s_ref[...] + jnp.sum(x, axis=-1, keepdims=True)

    # --- gather x[i, target[i]] via one-hot compare against global class ids
    class_ids = j * tc + lax.broadcasted_iota(jnp.int32, (tn, tc), 1)
    g_ref[...] = g_ref[...] + jnp.sum(
        jnp.where(class_ids == tgt, x, 0.0), axis=-1, keepdims=True)

    # --- finalize on the last class tile -------------------------------------
    @pl.when(j == num_c_steps - 1)
    def _():
        lse = m_ref[...] + jnp.log(l_ref[...])           # (tile_n, 1)
        nll = lse - g_ref[...]
        smooth = lse - s_ref[...] * (1.0 / num_classes)
        loss_ref[...] = (confidence * nll + smoothing * smooth).astype(loss_ref.dtype)


def _pick_tiles(n, c, itemsize):
    """Pick (tile_n, tile_c) conservatively for v5e/v6e/v7x VMEM budgets."""
    tile_n = n if n <= 256 else 256                      # multiple of 8 or full N
    # ~8 MiB budget for the double-buffered logits tile (fits the default
    # scoped VMEM on every generation, including v7x's 64 MiB physical).
    budget = 8 * 1024 * 1024
    max_c = max(128, budget // (2 * tile_n * itemsize))
    if c <= max_c:
        return tile_n, c
    tc = (max_c // 128) * 128
    while tc >= 128:
        if c % tc == 0:
            return tile_n, tc
        tc -= 128
    # TODO(synk): pad C to a multiple of 128 instead of falling back to full rows.
    return tile_n, c


def label_smoothing_cross_entropy(x, target, smoothing=0.1, reduction="mean",
                                  tile_n=None, tile_c=None):
    """x: (N, C) float logits (f32 or bf16); target: (N,) integer class ids."""
    n, c = x.shape
    confidence = 1.0 - smoothing
    tgt = target.astype(jnp.int32).reshape(n, 1)

    auto_n, auto_c = _pick_tiles(n, c, x.dtype.itemsize)
    tile_n = auto_n if tile_n is None else tile_n
    tile_c = auto_c if tile_c is None else tile_c

    kernel = functools.partial(_ls_ce_kernel, num_classes=c,
                               confidence=confidence, smoothing=smoothing)

    loss_rows = pl.pallas_call(
        kernel,
        out_shape=jax.ShapeDtypeStruct((n, 1), jnp.float32),
        grid_spec=pltpu.PrefetchScalarGridSpec(
            num_scalar_prefetch=0,
            grid=(pl.cdiv(n, tile_n), pl.cdiv(c, tile_c)),
            in_specs=[
                pl.BlockSpec((tile_n, tile_c), lambda i, j: (i, j)),   # logits
                pl.BlockSpec((tile_n, 1), lambda i, j: (i, 0)),        # targets
            ],
            out_specs=pl.BlockSpec((tile_n, 1), lambda i, j: (i, 0)),  # per-row loss
            scratch_shapes=[pltpu.VMEM((tile_n, 1), jnp.float32)] * 4,
        ),
        compiler_params=pltpu.CompilerParams(
            dimension_semantics=("parallel", "arbitrary"),
            vmem_limit_bytes=48 * 1024 * 1024,
        ),
    )(x, tgt)

    loss = loss_rows[:, 0]
    if reduction == "sum":
        return jnp.sum(loss)
    if reduction == "mean":
        return jnp.mean(loss)
    return loss


def _reference(x, target, smoothing=0.1):
    logp = jax.nn.log_softmax(x.astype(jnp.float32), axis=-1)
    nll = -jnp.take_along_axis(logp, target[:, None].astype(jnp.int32), axis=-1)[:, 0]
    smooth = -jnp.mean(logp, axis=-1)
    loss = (1.0 - smoothing) * nll + smoothing * smooth
    return jnp.mean(loss)


if __name__ == "__main__":
    key = jax.random.PRNGKey(0)
    kx, kt = jax.random.split(key)
    N, C = 16, 256                       # small synthetic shapes: batch=16, classes=256
    x = jax.random.normal(kx, (N, C), dtype=jnp.float32)
    target = jax.random.randint(kt, (N,), 0, C, dtype=jnp.int32)

    # Force multiple tiles on both grid axes to exercise the online-logsumexp
    # carry and the parallel N axis even at these small test shapes.
    loss = label_smoothing_cross_entropy(x, target, tile_n=8, tile_c=128)
    loss = jax.block_until_ready(loss)
    ref = _reference(x, target)
    assert jnp.allclose(loss, ref, rtol=1e-5, atol=1e-5), (loss, ref)

    # bf16 ingress path (upcast happens inside the kernel).
    x_bf16 = x.astype(jnp.bfloat16)
    loss_bf16 = jax.block_until_ready(
        label_smoothing_cross_entropy(x_bf16, target, tile_n=8, tile_c=128))
    ref_bf16 = _reference(x_bf16, target)
    assert jnp.allclose(loss_bf16, ref_bf16, rtol=1e-3, atol=1e-3), (loss_bf16, ref_bf16)

    print("KERNEL_OK")
</pallas_src>

<mosaic_0001>
module attributes {stable_mosaic.version = 11 : i64} {
  func.func @_ls_ce_kernel(%arg0: i32, %arg1: i32, %arg2: memref<8x128xf32, #tpu.memory_space<vmem>>, %arg3: memref<8x1xi32, #tpu.memory_space<vmem>>, %arg4: memref<8x1xf32, #tpu.memory_space<vmem>>, %arg5: memref<8x1xf32, #tpu.memory_space<vmem>>, %arg6: memref<8x1xf32, #tpu.memory_space<vmem>>, %arg7: memref<8x1xf32, #tpu.memory_space<vmem>>, %arg8: memref<8x1xf32, #tpu.memory_space<vmem>>) attributes {dimension_semantics = [#tpu.dimension_semantics<parallel>, #tpu.dimension_semantics<arbitrary>], iteration_bounds = array<i64: 2, 2>, scalar_prefetch = 0 : i64, scratch_operands = 4 : i64, tpu.core_type = #tpu.core_type<tc>, window_params = [{transform_indices = @transform_0, window_bounds = array<i64: 8, 128>}, {transform_indices = @transform_1, window_bounds = array<i64: 8, 1>}, {transform_indices = @transform_2, window_bounds = array<i64: 8, 1>}]} {
    %c0_i32 = arith.constant 0 : i32
    %0 = arith.cmpi eq, %arg1, %c0_i32 : i32
    %1 = arith.extui %0 : i1 to i32
    %c0_i32_0 = arith.constant 0 : i32
    %2 = arith.cmpi ne, %1, %c0_i32_0 : i32
    scf.if %2 {
      %cst_25 = arith.constant 0xFF800000 : f32
      %42 = vector.broadcast %cst_25 : f32 to vector<8x1xf32>
      %c0_26 = arith.constant 0 : index
      %c0_27 = arith.constant 0 : index
      %43 = vector.load %arg5[%c0_26, %c0_27] : memref<8x1xf32, #tpu.memory_space<vmem>>, vector<8x1xf32>
      tpu.vector_store %arg5[%c0_26, %c0_27], %42 {strides = array<i32>} : memref<8x1xf32, #tpu.memory_space<vmem>>, vector<8x1xf32>,
      %cst_28 = arith.constant 0.000000e+00 : f32
      %44 = vector.broadcast %cst_28 : f32 to vector<8x1xf32>
      %c0_29 = arith.constant 0 : index
      %c0_30 = arith.constant 0 : index
      %45 = vector.load %arg6[%c0_29, %c0_30] : memref<8x1xf32, #tpu.memory_space<vmem>>, vector<8x1xf32>
      tpu.vector_store %arg6[%c0_29, %c0_30], %44 {strides = array<i32>} : memref<8x1xf32, #tpu.memory_space<vmem>>, vector<8x1xf32>,
      %cst_31 = arith.constant 0.000000e+00 : f32
      %46 = vector.broadcast %cst_31 : f32 to vector<8x1xf32>
      %c0_32 = arith.constant 0 : index
      %c0_33 = arith.constant 0 : index
      %47 = vector.load %arg7[%c0_32, %c0_33] : memref<8x1xf32, #tpu.memory_space<vmem>>, vector<8x1xf32>
      tpu.vector_store %arg7[%c0_32, %c0_33], %46 {strides = array<i32>} : memref<8x1xf32, #tpu.memory_space<vmem>>, vector<8x1xf32>,
      %cst_34 = arith.constant 0.000000e+00 : f32
      %48 = vector.broadcast %cst_34 : f32 to vector<8x1xf32>
      %c0_35 = arith.constant 0 : index
      %c0_36 = arith.constant 0 : index
      %49 = vector.load %arg8[%c0_35, %c0_36] : memref<8x1xf32, #tpu.memory_space<vmem>>, vector<8x1xf32>
      tpu.vector_store %arg8[%c0_35, %c0_36], %48 {strides = array<i32>} : memref<8x1xf32, #tpu.memory_space<vmem>>, vector<8x1xf32>,
    } else {
    }
    %c0 = arith.constant 0 : index
    %c0_1 = arith.constant 0 : index
    %3 = vector.load %arg2[%c0, %c0_1] : memref<8x128xf32, #tpu.memory_space<vmem>>, vector<8x128xf32>
    %c0_2 = arith.constant 0 : index
    %c0_3 = arith.constant 0 : index
    %4 = vector.load %arg3[%c0_2, %c0_3] : memref<8x1xi32, #tpu.memory_space<vmem>>, vector<8x1xi32>
    %c0_4 = arith.constant 0 : index
    %c0_5 = arith.constant 0 : index
    %5 = vector.load %arg5[%c0_4, %c0_5] : memref<8x1xf32, #tpu.memory_space<vmem>>, vector<8x1xf32>
    %cst = arith.constant dense<0xFF800000> : vector<8xf32>
    %6 = vector.multi_reduction <maximumf>, %3, %cst [1] : vector<8x128xf32> to vector<8xf32>
    %7 = vector.shape_cast %6 : vector<8xf32> to vector<8x1xf32>
    %8 = arith.maximumf %5, %7 : vector<8x1xf32>
    %c0_6 = arith.constant 0 : index
    %c0_7 = arith.constant 0 : index
    %9 = vector.load %arg6[%c0_6, %c0_7] : memref<8x1xf32, #tpu.memory_space<vmem>>, vector<8x1xf32>
    %10 = arith.subf %5, %8 : vector<8x1xf32>
    %11 = math.exp %10 : vector<8x1xf32>
    %12 = arith.mulf %9, %11 : vector<8x1xf32>
    %13 = vector.broadcast %8 : vector<8x1xf32> to vector<8x128xf32>
    %14 = arith.subf %3, %13 : vector<8x128xf32>
    %15 = math.exp %14 : vector<8x128xf32>
    %cst_8 = arith.constant dense<0.000000e+00> : vector<8xf32>
    %16 = vector.multi_reduction <add>, %15, %cst_8 [1] : vector<8x128xf32> to vector<8xf32>
    %17 = vector.shape_cast %16 : vector<8xf32> to vector<8x1xf32>
    %18 = arith.addf %12, %17 : vector<8x1xf32>
    %c0_9 = arith.constant 0 : index
    %c0_10 = arith.constant 0 : index
    %19 = vector.load %arg6[%c0_9, %c0_10] : memref<8x1xf32, #tpu.memory_space<vmem>>, vector<8x1xf32>
    tpu.vector_store %arg6[%c0_9, %c0_10], %18 {strides = array<i32>} : memref<8x1xf32, #tpu.memory_space<vmem>>, vector<8x1xf32>,
    %c0_11 = arith.constant 0 : index
    %c0_12 = arith.constant 0 : index
    %20 = vector.load %arg5[%c0_11, %c0_12] : memref<8x1xf32, #tpu.memory_space<vmem>>, vector<8x1xf32>
    tpu.vector_store %arg5[%c0_11, %c0_12], %8 {strides = array<i32>} : memref<8x1xf32, #tpu.memory_space<vmem>>, vector<8x1xf32>,
    %c0_13 = arith.constant 0 : index
    %c0_14 = arith.constant 0 : index
    %21 = vector.load %arg7[%c0_13, %c0_14] : memref<8x1xf32, #tpu.memory_space<vmem>>, vector<8x1xf32>
    %cst_15 = arith.constant dense<0.000000e+00> : vector<8xf32>
    %22 = vector.multi_reduction <add>, %3, %cst_15 [1] : vector<8x128xf32> to vector<8xf32>
    %23 = vector.shape_cast %22 : vector<8xf32> to vector<8x1xf32>
    %24 = arith.addf %21, %23 : vector<8x1xf32>
    %c0_16 = arith.constant 0 : index
    %c0_17 = arith.constant 0 : index
    %25 = vector.load %arg7[%c0_16, %c0_17] : memref<8x1xf32, #tpu.memory_space<vmem>>, vector<8x1xf32>
    tpu.vector_store %arg7[%c0_16, %c0_17], %24 {strides = array<i32>} : memref<8x1xf32, #tpu.memory_space<vmem>>, vector<8x1xf32>,
    %c128_i32 = arith.constant 128 : i32
    %26 = arith.muli %arg1, %c128_i32 : i32
    %27 = tpu.iota {dimensions = array<i32: 1>} : vector<8x128xi32>
    %28 = vector.broadcast %26 : i32 to vector<8x128xi32>
    %29 = arith.addi %28, %27 : vector<8x128xi32>
    %c0_18 = arith.constant 0 : index
    %c0_19 = arith.constant 0 : index
    %30 = vector.load %arg8[%c0_18, %c0_19] : memref<8x1xf32, #tpu.memory_space<vmem>>, vector<8x1xf32>
    %31 = vector.broadcast %4 : vector<8x1xi32> to vector<8x128xi32>
    %32 = arith.cmpi eq, %29, %31 : vector<8x128xi32>
    %cst_20 = arith.constant 0.000000e+00 : f32
    %33 = vector.broadcast %cst_20 : f32 to vector<8x128xf32>
    %34 = arith.select %32, %3, %33 : vector<8x128xi1>, vector<8x128xf32>
    %cst_21 = arith.constant dense<0.000000e+00> : vector<8xf32>
    %35 = vector.multi_reduction <add>, %34, %cst_21 [1] : vector<8x128xf32> to vector<8xf32>
    %36 = vector.shape_cast %35 : vector<8xf32> to vector<8x1xf32>
    %37 = arith.addf %30, %36 : vector<8x1xf32>
    %c0_22 = arith.constant 0 : index
    %c0_23 = arith.constant 0 : index
    %38 = vector.load %arg8[%c0_22, %c0_23] : memref<8x1xf32, #tpu.memory_space<vmem>>, vector<8x1xf32>
    tpu.vector_store %arg8[%c0_22, %c0_23], %37 {strides = array<i32>} : memref<8x1xf32, #tpu.memory_space<vmem>>, vector<8x1xf32>,
    %c1_i32 = arith.constant 1 : i32
    %39 = arith.cmpi eq, %arg1, %c1_i32 : i32
    %40 = arith.extui %39 : i1 to i32
    %c0_i32_24 = arith.constant 0 : i32
    %41 = arith.cmpi ne, %40, %c0_i32_24 : i32
    scf.if %41 {
      %c0_25 = arith.constant 0 : index
      %c0_26 = arith.constant 0 : index
      %42 = vector.load %arg5[%c0_25, %c0_26] : memref<8x1xf32, #tpu.memory_space<vmem>>, vector<8x1xf32>
      %c0_27 = arith.constant 0 : index
      %c0_28 = arith.constant 0 : index
      %43 = vector.load %arg6[%c0_27, %c0_28] : memref<8x1xf32, #tpu.memory_space<vmem>>, vector<8x1xf32>
      %44 = math.log %43 : vector<8x1xf32>
      %45 = arith.addf %42, %44 : vector<8x1xf32>
      %c0_29 = arith.constant 0 : index
      %c0_30 = arith.constant 0 : index
      %46 = vector.load %arg8[%c0_29, %c0_30] : memref<8x1xf32, #tpu.memory_space<vmem>>, vector<8x1xf32>
      %47 = arith.subf %45, %46 : vector<8x1xf32>
      %c0_31 = arith.constant 0 : index
      %c0_32 = arith.constant 0 : index
      %48 = vector.load %arg7[%c0_31, %c0_32] : memref<8x1xf32, #tpu.memory_space<vmem>>, vector<8x1xf32>
      %cst_33 = arith.constant 3.906250e-03 : f32
      %49 = vector.broadcast %cst_33 : f32 to vector<8x1xf32>
      %50 = arith.mulf %48, %49 : vector<8x1xf32>
      %51 = arith.subf %45, %50 : vector<8x1xf32>
      %cst_34 = arith.constant 0.899999976 : f32
      %52 = vector.broadcast %cst_34 : f32 to vector<8x1xf32>
      %53 = arith.mulf %52, %47 : vector<8x1xf32>
      %cst_35 = arith.constant 1.000000e-01 : f32
      %54 = vector.broadcast %cst_35 : f32 to vector<8x1xf32>
      %55 = arith.mulf %54, %51 : vector<8x1xf32>
      %56 = arith.addf %53, %55 : vector<8x1xf32>
      %c0_36 = arith.constant 0 : index
      %c0_37 = arith.constant 0 : index
      %57 = vector.load %arg4[%c0_36, %c0_37] : memref<8x1xf32, #tpu.memory_space<vmem>>, vector<8x1xf32>
      tpu.vector_store %arg4[%c0_36, %c0_37], %56 {strides = array<i32>} : memref<8x1xf32, #tpu.memory_space<vmem>>, vector<8x1xf32>,
    } else {
    }
    return
  }
  func.func @transform_0(%arg0: i32, %arg1: i32) -> (i32, i32) {
    %c0_i32 = arith.constant 0 : i32
    return %arg0, %arg1 : i32, i32
  }
  func.func @transform_1(%arg0: i32, %arg1: i32) -> (i32, i32) {
    %c0_i32 = arith.constant 0 : i32
    %c0_i32_0 = arith.constant 0 : i32
    return %arg0, %c0_i32 : i32, i32
  }
  func.func @transform_2(%arg0: i32, %arg1: i32) -> (i32, i32) {
    %c0_i32 = arith.constant 0 : i32
    %c0_i32_0 = arith.constant 0 : i32
    return %arg0, %c0_i32 : i32, i32
  }
}

</mosaic_0001>

<bundles_post_ra>
// kernel: tpu_custom_call.1
= control target key start
LH: loop header
LB: loop body
LE: loop exit
PB: predicated region body
PF: predicated region fallthrough
CT: control target
= control target key end

     0   :  { %7 = vsyncpa [#allocation7], 0  ;;  %s706_s0 = inlined_call_operand.hbm [shape: f32[16,256], index: 0, kind: input, shape index: {}]   ;;  %s707_s1 = inlined_call_operand.vmem [shape: s32[16,1], index: 1, kind: input, shape index: {}]   ;;  %s708_s2 = inlined_call_operand.vmem [shape: f32[16,1], index: 2, kind: output, shape index: {}]  }
   0x1   :  { %9 = vsyncpa [#allocation7 + $0x1], 0  ;;  %s567_s9 = smov 0   ;;  %s569_s10 = smov 0  }
   0x2   :  { %s571_s11 = smov 0   ;;  %s573_s12 = smov 0  }
   0x3   :  { %s575_s13 = smov 0   ;;  %s577_s14 = smov 0  }
   0x4   :  { %s579_s15 = smov 0   ;;  %s581_s16 = smov 0  }
   0x5 LB: > { %s354_s17 = sadd.s32 4294967295, %s546_s16   ;;  %s24_s18 = sadd.s32 1, %s538_s14  ;;  %s546_s16 = sphi %s581_s16, %s15_s16   ;;  %s542_s15 = sphi %s579_s15, %s718_s15   ;;  %s538_s14 = sphi %s577_s14, %s717_s14   ;;  %s534_s13 = sphi %s575_s13, %s716_s13   ;;  %s530_s12 = sphi %s573_s12, %s715_s12   ;;  %s526_s11 = sphi %s571_s11, %s714_s11   ;;  %s522_s10 = sphi %s569_s10, %s713_s10   ;;  %s518_s9 = sphi %s567_s9, %s712_s9  }
   0x6   : > { %p25_p0 = scmp.ge.s32.totalorder %s24_s18, 2  ;;  %s27_s19 = sadd.s32 1, %s542_s15 }
   0x7   : > { %s36_s20 = sadd.s32 1, %s526_s11  ;;  %p43_p1 = scmp.ne.s32.totalorder %s526_s11, %s522_s10 }
   0x8   : > { %s720_s18 = smov (%p25_p0, %s24_s18), 0  ;;  %s722_s19 = smov (!%p25_p0, %s27_s19), %s542_s15 }
   0x9   : > { %s32_s21 = ssub.s32 %s538_s14, %s720_s18  ;;  %p44_p2 = scmp.eq.s32.totalorder %s546_s16, 0 }
   0xa   : > { %p29_p3 = scmp.ge.s32.totalorder %s722_s19, 2  ;;  %p49_p4 = scmp.ne.s32.totalorder %s522_s10, %s518_s9 }
   0xb   : > { %p618_p5 = por %p44_p2, %p43_p1  ;;  %p50_p6 = scmp.eq.s32.totalorder %s354_s17, 0 }
   0xc   : > { %s724_s19 = smov (%p29_p3, %s722_s19), 0  ;;  %p376_p8 = scmp.lt.s32.totalorder %s546_s16, 4 }
   0xd   : > { %p624_p7 = por %p50_p6, %p49_p4  ;;  %s31_s24 = ssub.s32 %s542_s15, %s724_s19 }
   0xe   : > { %s33_s25 = sor.u32 %s32_s21, %s31_s24  ;;  %s125_s26 = sand.u32 1, %s526_s11  }
   0xf   : > { %p34_p9 = scmp.eq.s32.totalorder %s33_s25, 0  ;;  %s358_s27 = sshll.u32 %s125_s26, 3 }
  0x10   : > { %s359_s28 = sshll.u32 %s542_s15, 1  ;;  %s129_s4 = scalar_lea.vmem [#allocation6], %s358_s27 }
  0x11   : > { %s634_s29 = scalar_select %p34_p9, %s526_s11, %s36_s20  }
  0x12   : > { %s134_s30 = sadd.s32 %s538_s14, %s359_s28  ;;  %s138_s5 = sshll.u32 %s129_s4, 4  ;;  %s139_s5 = int_to_ptr.vmem [resolvable:$true] %s138_s5 }
  0x13   : > { %s360_s3 = sshll.u32 %s134_s30, 7  ;;  %p644_p10 = pnand %p376_p8, %p618_p5 }
  0x14   : > { %s136_s8 = scalar_lea.hbm %s706_s0, %s360_s3  ;;  %p361_p11 = scmp.ge.s32.totalorder %s546_s16, 1 }
  0x15   : > { %p150_p12 = scmp.lt.s32.totalorder %s546_s16, 5  ;;  %s126_s17 = scalar_lea.sflag [#allocation7], %s125_s26 }
  0x16   : > { %p454_p13 = pneg %p644_p10  ;;  %s465_s20 = scalar_lea.vmem %s139_s5, 128 }
  0x17   : > { %p466_p0 = scmp.ne.s32.totalorder %s139_s5, %s465_s20  ;;  %s548_s21 = smov [#allocation6]  }
  0x18   : > { %s470_s24 = sshll.u32 %s548_s21, 4  ;;  %s471_s24 = int_to_ptr.vmem [resolvable:$false] %s470_s24 }
  0x19   : > { %p468_p1 = pnand %p466_p0, %p454_p13  ;;  %s472_s25 = scalar_lea.vmem %s471_s24, 256 }
  0x1a   : > { %p473_p3 = scmp.lt.s32.totalorder %s139_s5, %s471_s24  ;;  %p474_p4 = scmp.lt.s32.totalorder %s472_s25, %s465_s20 }
  0x1b   : > { %p469_p2 = pneg %p468_p1 }
  0x1c   : > { %p475_p5 = por %p474_p4, %p473_p3 }
  0x1e   : > { %p476_p6 = pnand %p475_p5, %p469_p2 }
  0x20   : > { %479 = shalt.err (!%p476_p6)
}
  0x21   : > { %375 = dma.hbm_to_vmem [thread:$0]  (!%p644_p10), %s136_s8, 128, %s139_s5, %s126_s17  }
  0x22   : > { %p151_p8 = pnand %p361_p11, %p150_p12 }
  0x23   : > { %s156_s22 = sand.u32 (!%p151_p8), 1, %s522_s10  }
  0x24   : > { %154 = sbr.rel (%p151_p8) target bundleno = 508 (0x1fc), region = 28  ;;  %s362_s26 = sshll.u32 (!%p151_p8), %s156_s22, 3 }
  0x25   : > { %s157_s27 = scalar_lea.sflag (!%p151_p8), [#allocation7], %s156_s22  ;;  %s160_s28 = scalar_lea.vmem (!%p151_p8), [#allocation6], %s362_s26 }
  0x29   : > { %513 = dma.done.wait (%p624_p7), %s157_s27, 128  }
  0x2a   : > { %515 = vsyncadd (%p624_p7), %s157_s27, 4294967168  ;;  %p184_p9 = scmp.lt.s32.totalorder %s534_s13, 1  ;;  %p365_p10 = scmp.ne.s32.totalorder %s530_s12, 0 }
  0x2c   : > { %s726_s13 = smov (!%p184_p9, %s534_s13), 1  ;;  %195 = sbr.rel (%p365_p10) target bundleno = 52 (0x34), region = 36 }
  0x2d   : > { %s363_s30 = sshll.u32 %s726_s13, 3 }
  0x2e   : > { %s187_s5 = scalar_lea.vmem %s707_s1, %s363_s30  ;;  %s671_s8 = scalar_lea.vmem %s708_s2, %s363_s30 }
  0x31   : > { %vm196_vm0 = vcmask 7168   ;;  %v549_v0 = vmov -inf   ;;  %v550_v1 = vmov 0.0  }
  0x32   : > { %197 = vst.msk [vmem:[#allocation2] sm:$0xff] %vm196_vm0, %v549_v0  ;;  %198 = vst.msk [vmem:[#allocation3] sm:$0xff] %vm196_vm0, %v550_v1 }
  0x33   : > { %199 = vst.msk [vmem:[#allocation4] sm:$0xff] %vm196_vm0, %v550_v1  ;;  %200 = vst.msk [vmem:[#allocation5] sm:$0xff] %vm196_vm0, %v550_v1 }
  0x34 PF: > { %v201_v2 = vld [vmem:[%s160_s28] sm:$0xff]  ;;  %v551_v3 = vmov 0   ;;  %vm223_vm1 = vcmask 7168   ;;  %v232_v16 = vlaneseq  ;;  %s366_s13 = sshll.u32 %s530_s12, 7  ;;  %p367_p7 = scmp.ne.s32.totalorder %s530_s12, 1 }
  0x35   : > { %204 = vmax.xlane.f32.xlu0 %v201_v2  ;;  %445 = vset.pattern.permute.xlu1 %v551_v3  ;;  %v202_v4 = vld [vmem:[%s187_s5] sm:$0xff]  ;;  %v234_v18 = vstv %s366_s13 }
  0x36   : > { %444 = vset.pattern.permute.xlu0 %v551_v3  ;;  %238 = vperm.xlu1 %445, %v202_v4   ;;  %v233_v17 = vand.u32 127, %v232_v16 }
  0x38   : > { %v235_v19 = vadd.s32 %v234_v18, %v233_v17 }
  0x39   : > { %v203_v5 = vld [vmem:[#allocation2] sm:$0xff]  ;;  %v207_v24 = vld [vmem:[#allocation3] sm:$0xff] }
  0x3a   : > { %v226_v10 = vld [vmem:[#allocation4] sm:$0xff]  ;;  %v236_v28 = vld [vmem:[#allocation5] sm:$0xff] }
  0x5a   : > { %227 = vadd.xlane.f32.xlu1 %v201_v2 }
  0xb1   : > { %v239_v9 = vpop.permute.xlu1 %238 }
  0xb2   : > { %vm240_vm2 = vcmp.eq.s32.totalorder %v235_v19, %v239_v9 }
  0xb3   : > { %v241_v21 = vsel %vm240_vm2, %v201_v2, 0.0 }
  0xbe   : > { %v205_v6 = vpop.xlane.xlu0 %204 }
  0xbf   : > { %v206_v7 = vmax.f32 %v203_v5, %v205_v6 }
  0xc1   : > { %v208_v8 = vsub.f32 %v203_v5, %v206_v7  ;;  %225 = vst.msk [vmem:[#allocation2] sm:$0xff] %vm223_vm1, %v206_v7  ;;  %214 = vperm.xlu0 %444, %v206_v7  }
  0xc3   : > { %v209_v22 = vmul.f32 1.442695, %v208_v8 }
  0xe3   : > { %v228_v11 = vpop.xlane.xlu1 %227 }
  0xe4   : > { %v229_v12 = vadd.f32 %v228_v11, %v226_v10 }
  0xe6   : > { %230 = vst.msk [vmem:[#allocation4] sm:$0xff] %vm223_vm1, %v229_v12 }
 0x13c   : > { %v215_v13 = vpop.permute.xlu0 %214 }
 0x13d   : > { %v217_v14 = vsub.f32 %v201_v2, %v215_v13 }
 0x13f   : > { %v218_v15 = vmul.f32 1.442695, %v217_v14 }
 0x141   : > { %446 = vpow2.f32 %v218_v15 }
 0x142   : > { %448 = vpow2.f32 %v209_v22 }
 0x14e   : > { %v447_v20 = vpop.eup %446 }
 0x14f   : > { %220 = vadd.xlane.f32.xlu1 %v447_v20  ;;  %v449_v23 = vpop.eup %448 }
 0x150   : > { %v211_v25 = vmul.f32 %v449_v23, %v207_v24 }
 0x153   : > { %242 = vadd.xlane.f32.xlu1 %v241_v21 }
 0x1d8   : > { %v221_v26 = vpop.xlane.xlu1 %220 }
 0x1d9   : > { %v222_v27 = vadd.f32 %v221_v26, %v211_v25 }
 0x1db   : > { %224 = vst.msk [vmem:[#allocation3] sm:$0xff] %vm223_vm1, %v222_v27  ;;  %249 = sbr.rel (%p367_p7) target bundleno = 508 (0x1fc), region = 40 }
 0x1dc   : > { %v243_v29 = vpop.xlane.xlu1 %242 }
 0x1dd   : > { %v244_v30 = vadd.f32 %v243_v29, %v236_v28 }
 0x1df   : > { %245 = vst.msk [vmem:[#allocation5] sm:$0xff] %vm223_vm1, %v244_v30 }
 0x1e0   : > { %v257_v32 = vld [vmem:[#allocation4] sm:$0xff]  ;;  %v250_v34 = vld [vmem:[#allocation2] sm:$0xff] }
 0x1e1   : > { %v258_v36 = vmul.f32 0.00390625, %v257_v32 }
 0x1e2   : > { %v251_v31 = vld [vmem:[#allocation3] sm:$0xff] }
 0x1e3   : > { %450 = vlog2.f32 %v251_v31 }
 0x1e6   : > { %v255_v37 = vld [vmem:[#allocation5] sm:$0xff] }
 0x1f0   : > { %v451_v33 = vpop.eup %450 }
 0x1f1   : > { %v253_v35 = vmul.f32 0.6931472, %v451_v33 }
 0x1f3   : > { %v254_v38 = vadd.f32 %v253_v35, %v250_v34 }
 0x1f5   : > { %v256_v39 = vsub.f32 %v254_v38, %v255_v37  ;;  %v259_v40 = vsub.f32 %v254_v38, %v258_v36 }
 0x1f7   : > { %v260_v41 = vmul.f32 0.9, %v256_v39  ;;  %v261_v42 = vmul.f32 0.1, %v259_v40 }
 0x1f9   : > { %v262_v43 = vadd.f32 %v261_v42, %v260_v41 }
 0x1fb   : > { %263 = vst.msk [vmem:[%s671_s8] sm:$0xff] %vm223_vm1, %v262_v43 }
 0x1fc PF: > { %s15_s16 = sadd.s32 1, %s546_s16   ;;  %s712_s9 = smov %s522_s10 }
 0x1fd   : > { %p12_p11 = scmp.ge.s32.totalorder %s15_s16, 6   ;;  %s713_s10 = smov %s526_s11 }
 0x1fe   : > { %s714_s11 = smov %s634_s29  ;;  %s715_s12 = smov %s538_s14 }
 0x1ff   : > { %s716_s13 = smov %s542_s15  ;;  %s717_s14 = smov %s720_s18 }
 0x200   : > { %s718_s15 = smov %s724_s19  ;;  %14 = sbr.rel (!%p12_p11) target bundleno = 5 (0x5), region = 79 }
 0x205   :  { %283 = vsyncpa [#allocation7], 1 }
 0x206   :  { %285 = vsyncpa [#allocation7 + $0x1], 1 }

</bundles_post_ra>
